<compile_context>
chip_gen: v6e
topology: v6e:2x2x1
jax: 0.10.0
libtpu: 0.0.40
codegen_flags: <defaults>
</compile_context>

<pallas_src>
import functools

import jax
import jax.numpy as jnp
from jax.experimental import pallas as pl
from jax.experimental.pallas import tpu as pltpu


def logit_kernel(x_ref, y_ref, logdet_ref, *, feat, tile_f, mask_cols,
                 approx_recip):
    k = pl.program_id(1)

    # The logdet output block index is constant along the feature grid axis, so
    # it stays resident in VMEM across it: zero at k==0, accumulate each step,
    # and the final value is written back to HBM after the last k.
    @pl.when(k == 0)
    def _():
        logdet_ref[...] = jnp.zeros_like(logdet_ref)

    x = x_ref[...].astype(jnp.float32)

    if mask_cols:
        # Feature-edge block: zero the padded columns so exp/log see finite
        # values and the padding contributes nothing to the per-row sum.
        col = jax.lax.broadcasted_iota(jnp.int32, x.shape, 1) + k * tile_f
        valid = col < feat
        x = jnp.where(valid, x, 0.0)

    ax = jnp.abs(x)
    t = jnp.exp(-ax)                              # one EUP exp feeds both paths
    denom = 1.0 + t
    if approx_recip:
        inv = pl.reciprocal(denom, approx=True)   # EUP vrcp; ~1e-4 rel error
    else:
        inv = 1.0 / denom                         # exact divide for f32 outputs
    s = jnp.where(x >= 0.0, inv, t * inv)         # sigmoid(x), stable for all x
    y_ref[...] = s.astype(y_ref.dtype)

    # log(sigmoid(x) * (1 - sigmoid(x))) == -|x| - 2*log(1 + exp(-|x|))
    elem = -ax - 2.0 * jnp.log(denom)
    if mask_cols:
        elem = jnp.where(valid, elem, 0.0)

    # Per-row feature reduction on the XLU (idle unit in this memory-bound
    # kernel); accumulate into the resident (tb, 1) f32 output block.  The
    # reduction stays strictly per-row, so garbage in padded batch rows never
    # leaks into valid rows.
    logdet_ref[...] += jnp.sum(elem, axis=-1, keepdims=True)


def _tpu_params():
    """Returns (target f32-block bytes, max rows per block, vmem_limit_bytes)."""
    try:
        vmem = int(pltpu.get_tpu_info().vmem_capacity_bytes)
    except Exception:
        try:
            kind = jax.devices()[0].device_kind.lower()
            vmem = (64 << 20) if "v7" in kind else (128 << 20)
        except Exception:
            vmem = 64 << 20                       # conservative (v7x-sized)
    if vmem >= (96 << 20):                        # v5e / v6e: 128 MiB VMEM
        return 4 << 20, 8192, 64 << 20
    return 2 << 20, 4096, 48 << 20                # v7x: 64 MiB VMEM


def _choose_tiles(batch, feat, target_f32_bytes, max_tb):
    """Pick (tb, tf, mask_cols) obeying the (8, 128) BlockSpec constraints."""
    # Feature tile: full F unless even an 8-row full-F f32 block exceeds the
    # target, in which case tile F in 128-column multiples (wide-feature path).
    if 8 * feat * 4 <= target_f32_bytes or feat <= 128:
        tf = feat
    else:
        tf = max(128, (target_f32_bytes // (8 * 4) // 128) * 128)
    mask_cols = (tf != feat) and (feat % tf != 0)

    # Batch tile: as many rows as fit the f32 target, multiple of 8 (or the
    # whole batch in a single block).
    rows_fit = max(8, min(max_tb, (target_f32_bytes // (tf * 4) // 8) * 8))
    if batch <= rows_fit and batch < 256:
        return batch, tf, mask_cols               # single batch block
    tb = rows_fit
    if batch >= 256:
        # Split into >= 2 batch blocks so the "parallel" axis feeds both
        # TensorCores on v7x.
        half = (((batch + 1) // 2) + 7) // 8 * 8
        tb = min(tb, half)
    tb = max(8, (tb // 8) * 8)
    return tb, tf, mask_cols


@jax.jit
def logit_forward(x):
    """Pallas equivalent of Logit.forward(x, cond_inputs=None, mode='direct').

    Returns (sigmoid(x), logdet); logdet is kept in float32 on purpose.
    """
    orig_shape = x.shape
    feat = orig_shape[-1]
    x2 = x.reshape(-1, feat)
    batch = x2.shape[0]

    target, max_tb, vmem_limit = _tpu_params()
    tb, tf, mask_cols = _choose_tiles(batch, feat, target, max_tb)
    grid = (pl.cdiv(batch, tb), pl.cdiv(feat, tf))

    kernel = functools.partial(
        logit_kernel, feat=feat, tile_f=tf, mask_cols=mask_cols,
        approx_recip=(x2.dtype != jnp.float32))

    y2, logdet2 = pl.pallas_call(
        kernel,
        out_shape=(
            jax.ShapeDtypeStruct((batch, feat), x2.dtype),
            jax.ShapeDtypeStruct((batch, 1), jnp.float32),
        ),
        grid_spec=pltpu.PrefetchScalarGridSpec(
            num_scalar_prefetch=0,
            grid=grid,
            in_specs=[pl.BlockSpec((tb, tf), lambda i, k: (i, k))],
            out_specs=[
                pl.BlockSpec((tb, tf), lambda i, k: (i, k)),
                pl.BlockSpec((tb, 1), lambda i, k: (i, 0)),
            ],
        ),
        compiler_params=pltpu.CompilerParams(
            dimension_semantics=("parallel", "arbitrary"),
            vmem_limit_bytes=vmem_limit,
        ),
    )(x2)

    y = y2.reshape(orig_shape)
    logdet = logdet2.reshape(orig_shape[:-1] + (1,))
    return y, logdet


def _reference(x):
    x = x.astype(jnp.float32)
    s = jax.nn.sigmoid(x)
    logdet = jnp.sum(jnp.log(s * (1.0 - s)), axis=-1, keepdims=True)
    return s, logdet


if __name__ == "__main__":
    # Logit has no learnable parameters (nn.Module with empty __init__).
    key = jax.random.PRNGKey(0)
    k1, k2, k3 = jax.random.split(key, 3)

    # Small shape matching the module's (batch, features) layout.
    x_small = jax.random.normal(k1, (8, 32), dtype=jnp.float32)
    y_s, ld_s = jax.block_until_ready(logit_forward(x_small))
    yr_s, ldr_s = _reference(x_small)
    assert y_s.shape == (8, 32) and ld_s.shape == (8, 1)
    assert jnp.allclose(y_s, yr_s, atol=1e-5, rtol=1e-5)
    assert jnp.allclose(ld_s, ldr_s, atol=1e-3, rtol=1e-4)

    # Non-divisible batch >= 256: exercises the two-block megacore split and a
    # partial batch edge block.
    x_med = jax.random.normal(k2, (300, 256), dtype=jnp.float32) * 2.0
    y_m, ld_m = jax.block_until_ready(logit_forward(x_med))
    yr_m, ldr_m = _reference(x_med)
    assert y_m.shape == (300, 256) and ld_m.shape == (300, 1)
    assert jnp.allclose(y_m, yr_m, atol=1e-5, rtol=1e-5)
    assert jnp.allclose(ld_m, ldr_m, atol=1e-3, rtol=1e-4)

    # bf16 input: exercises the approx-reciprocal branch; y stays bf16, logdet
    # stays f32.
    x_bf = (jax.random.normal(k3, (64, 128), dtype=jnp.float32) * 2.0
            ).astype(jnp.bfloat16)
    y_b, ld_b = jax.block_until_ready(logit_forward(x_bf))
    yr_b, ldr_b = _reference(x_bf)
    assert y_b.dtype == jnp.bfloat16 and ld_b.shape == (64, 1)
    assert jnp.allclose(y_b.astype(jnp.float32), yr_b, atol=1e-2)
    assert jnp.allclose(ld_b, ldr_b, atol=5e-2, rtol=1e-3)

    print("KERNEL_OK")
</pallas_src>

<mosaic_0001>
module attributes {stable_mosaic.version = 11 : i64} {
  func.func @logit_kernel(%arg0: i32, %arg1: i32, %arg2: memref<8x32xf32, #tpu.memory_space<vmem>>, %arg3: memref<8x32xf32, #tpu.memory_space<vmem>>, %arg4: memref<8x1xf32, #tpu.memory_space<vmem>>) attributes {dimension_semantics = [#tpu.dimension_semantics<parallel>, #tpu.dimension_semantics<arbitrary>], iteration_bounds = array<i64: 1, 1>, scalar_prefetch = 0 : i64, scratch_operands = 0 : i64, tpu.core_type = #tpu.core_type<tc>, window_params = [{transform_indices = @transform_0, window_bounds = array<i64: 8, 32>}, {transform_indices = @transform_1, window_bounds = array<i64: 8, 32>}, {transform_indices = @transform_2, window_bounds = array<i64: 8, 1>}]} {
    %c0_i32 = arith.constant 0 : i32
    %0 = arith.cmpi eq, %arg1, %c0_i32 : i32
    %1 = arith.extui %0 : i1 to i32
    %c0_i32_0 = arith.constant 0 : i32
    %2 = arith.cmpi ne, %1, %c0_i32_0 : i32
    scf.if %2 {
      %cst_14 = arith.constant 0.000000e+00 : f32
      %28 = vector.broadcast %cst_14 : f32 to vector<8x1xf32>
      %c0_15 = arith.constant 0 : index
      %c0_16 = arith.constant 0 : index
      %29 = vector.load %arg4[%c0_15, %c0_16] : memref<8x1xf32, #tpu.memory_space<vmem>>, vector<8x1xf32>
      tpu.vector_store %arg4[%c0_15, %c0_16], %28 {strides = array<i32>} : memref<8x1xf32, #tpu.memory_space<vmem>>, vector<8x1xf32>,
    } else {
    }
    %c0 = arith.constant 0 : index
    %c0_1 = arith.constant 0 : index
    %3 = vector.load %arg2[%c0, %c0_1] : memref<8x32xf32, #tpu.memory_space<vmem>>, vector<8x32xf32>
    %4 = math.absf %3 : vector<8x32xf32>
    %cst = arith.constant 0.000000e+00 : f32
    %5 = vector.broadcast %cst : f32 to vector<8x32xf32>
    %6 = arith.subf %5, %4 : vector<8x32xf32>
    %7 = math.exp %6 : vector<8x32xf32>
    %cst_2 = arith.constant 1.000000e+00 : f32
    %8 = vector.broadcast %cst_2 : f32 to vector<8x32xf32>
    %9 = arith.addf %8, %7 : vector<8x32xf32>
    %cst_3 = arith.constant 1.000000e+00 : f32
    %10 = vector.broadcast %cst_3 : f32 to vector<8x32xf32>
    %11 = arith.divf %10, %9 : vector<8x32xf32>
    %cst_4 = arith.constant 0.000000e+00 : f32
    %12 = vector.broadcast %cst_4 : f32 to vector<8x32xf32>
    %13 = arith.cmpf oge, %3, %12 : vector<8x32xf32>
    %14 = arith.mulf %7, %11 : vector<8x32xf32>
    %15 = arith.select %13, %11, %14 : vector<8x32xi1>, vector<8x32xf32>
    %c0_5 = arith.constant 0 : index
    %c0_6 = arith.constant 0 : index
    %16 = vector.load %arg3[%c0_5, %c0_6] : memref<8x32xf32, #tpu.memory_space<vmem>>, vector<8x32xf32>
    tpu.vector_store %arg3[%c0_5, %c0_6], %15 {strides = array<i32>} : memref<8x32xf32, #tpu.memory_space<vmem>>, vector<8x32xf32>,
    %cst_7 = arith.constant 0.000000e+00 : f32
    %17 = vector.broadcast %cst_7 : f32 to vector<8x32xf32>
    %18 = arith.subf %17, %4 : vector<8x32xf32>
    %19 = math.log %9 : vector<8x32xf32>
    %cst_8 = arith.constant 2.000000e+00 : f32
    %20 = vector.broadcast %cst_8 : f32 to vector<8x32xf32>
    %21 = arith.mulf %20, %19 : vector<8x32xf32>
    %22 = arith.subf %18, %21 : vector<8x32xf32>
    %c0_9 = arith.constant 0 : index
    %c0_10 = arith.constant 0 : index
    %23 = vector.load %arg4[%c0_9, %c0_10] : memref<8x1xf32, #tpu.memory_space<vmem>>, vector<8x1xf32>
    %cst_11 = arith.constant dense<0.000000e+00> : vector<8xf32>
    %24 = vector.multi_reduction <add>, %22, %cst_11 [1] : vector<8x32xf32> to vector<8xf32>
    %25 = vector.shape_cast %24 : vector<8xf32> to vector<8x1xf32>
    %26 = arith.addf %23, %25 : vector<8x1xf32>
    %c0_12 = arith.constant 0 : index
    %c0_13 = arith.constant 0 : index
    %27 = vector.load %arg4[%c0_12, %c0_13] : memref<8x1xf32, #tpu.memory_space<vmem>>, vector<8x1xf32>
    tpu.vector_store %arg4[%c0_12, %c0_13], %26 {strides = array<i32>} : memref<8x1xf32, #tpu.memory_space<vmem>>, vector<8x1xf32>,
    return
  }
  func.func @transform_0(%arg0: i32, %arg1: i32) -> (i32, i32) {
    %c0_i32 = arith.constant 0 : i32
    return %arg0, %arg1 : i32, i32
  }
  func.func @transform_1(%arg0: i32, %arg1: i32) -> (i32, i32) {
    %c0_i32 = arith.constant 0 : i32
    return %arg0, %arg1 : i32, i32
  }
  func.func @transform_2(%arg0: i32, %arg1: i32) -> (i32, i32) {
    %c0_i32 = arith.constant 0 : i32
    %c0_i32_0 = arith.constant 0 : i32
    return %arg0, %c0_i32 : i32, i32
  }
}

</mosaic_0001>

<bundles_post_ra>
// kernel: logit_forward.1
= control target key start
LH: loop header
LB: loop body
LE: loop exit
PB: predicated region body
PF: predicated region fallthrough
CT: control target
= control target key end

     0   :  { %8 = vsyncpa [#allocation3], 0  ;;  %s160_s0 = inlined_call_operand.hbm [shape: f32[8,32], index: 0, kind: input, shape index: {}]   ;;  %s161_s1 = inlined_call_operand.hbm [shape: f32[8,32], index: 1, kind: output, shape index: {0}]   ;;  %s162_s2 = inlined_call_operand.vmem [shape: f32[8,1], index: 2, kind: output, shape index: {1}]  }
   0x1   :  { %9 = vsyncpa [#allocation4], 0  ;;  %s125_s9 = smov [#allocation2]  }
   0x2   :  { %s16_s10 = sshll.u32 %s125_s9, 4  ;;  %s17_s10 = int_to_ptr.vmem [resolvable:$true] %s16_s10 }
   0x3   :  { %s89_s11 = scalar_lea.vmem %s17_s10, 128  ;;  %p94_p1 = scmp.lt.s32.totalorder %s17_s10, %s17_s10 }
   0x4   :  { %p90_p0 = scmp.ne.s32.totalorder %s17_s10, %s89_s11  ;;  %p95_p2 = scmp.lt.s32.totalorder %s89_s11, %s89_s11 }
   0x6   :  { %p96_p3 = por %p95_p2, %p94_p1 }
   0x8   :  { %p97_p4 = pnand %p96_p3, %p90_p0 }
   0xa   :  { %100 = shalt.err (!%p97_p4)
}
   0xb   :  { %19 = dma.hbm_to_vmem [thread:$0]  %s160_s0, 128, %s17_s10, [#allocation3]  }
   0xc   :  { %121 = dma.done.wait [#allocation3], 128  }
   0xd   :  { %122 = vsyncadd [#allocation3], 4294967168  ;;  %vm27_vm0 = vcmask 7168   ;;  %v126_v0 = vmov 0.0   ;;  %v29_v1 = vld [vmem:[#allocation2] sm:$0xff]  ;;  %vm40_vm1 = vcmask 261120  }
   0xe   :  { %28 = vst.msk [vmem:[%s162_s2] sm:$0xff] %vm27_vm0, %v126_v0  ;;  %v30_v2 = vand.u32 2147483647, %v29_v1  ;;  %vm37_vm2 = vcmp.ge.f32.partialorder %v29_v1, 0.0  ;;  %s127_s0 = smov [#allocation5]  }
   0xf   :  { %s59_s16 = sshll.u32 %s127_s0, 4  ;;  %s60_s16 = int_to_ptr.vmem [resolvable:$true] %s59_s16 }
  0x10   :  { %v31_v3 = vsub.f32 0.0, %v30_v2  ;;  %s101_s17 = scalar_lea.vmem %s60_s16, 128  ;;  %p106_p6 = scmp.lt.s32.totalorder %s60_s16, %s60_s16 }
  0x11   :  { %p102_p5 = scmp.ne.s32.totalorder %s60_s16, %s101_s17  ;;  %p107_p7 = scmp.lt.s32.totalorder %s101_s17, %s101_s17 }
  0x12   :  { %v32_v4 = vmul.f32 1.442695, %v31_v3 }
  0x13   :  { %p108_p8 = por %p107_p7, %p106_p6 }
  0x14   :  { %75 = vpow2.f32 %v32_v4 }
  0x15   :  { %p109_p9 = pnand %p108_p8, %p102_p5 }
  0x21   :  { %v76_v5 = vpop.eup %75 }
  0x22   :  { %v34_v6 = vadd.f32 1.0, %v76_v5 }
  0x24   :  { %77 = vlog2.f32 %v34_v6 }
  0x25   :  { %79 = vrcp.f32 %v34_v6 }
  0x31   :  { %v78_v7 = vpop.eup %77 }
  0x32   :  { %v43_v8 = vmul.f32 0.6931472, %v78_v7  ;;  %v80_v12 = vpop.eup %79 }
  0x33   :  { %v38_v13 = vmul.f32 %v80_v12, %v76_v5 }
  0x34   :  { %v44_v9 = vmul.f32 2.0, %v43_v8 }
  0x35   :  { %v39_v14 = vsel %vm37_vm2, %v80_v12, %v38_v13 }
  0x36   :  { %v45_v10 = vsub.f32 %v31_v3, %v44_v9  ;;  %41 = vst.msk [vmem:[#allocation5] sm:$0xff] %vm40_vm1, %v39_v14 }
  0x38   :  { %v47_v11 = vsel %vm40_vm1, %v45_v10, 0.0 }
  0x39   :  { %48 = vadd.xlane.f32.xlu0 %v47_v11 }
  0x3a   :  { %112 = shalt.err (!%p109_p9)
}
  0x3b   :  { %62 = dma.vmem_to_hbm [thread:$0]  %s60_s16, 128, %s161_s1, [#allocation4]   ;;  %v46_v15 = vld [vmem:[%s162_s2] sm:$0xff] }
  0xc2   :  { %v49_v16 = vpop.xlane.xlu0 %48 }
  0xc3   :  { %v50_v17 = vadd.f32 %v49_v16, %v46_v15 }
  0xc5   :  { %52 = vst.msk [vmem:[%s162_s2] sm:$0xff] %vm27_vm0, %v50_v17 }
  0xc6   :  { %123 = dma.done.wait [#allocation4], 128  }
  0xc7   :  { %124 = vsyncadd [#allocation4], 4294967168 }
  0xc8   :  { %70 = vsyncpa [#allocation3], 1 }
  0xc9   :  { %71 = vsyncpa [#allocation4], 1 }

</bundles_post_ra>
